<compile_context>
chip_gen: v5e
topology: v5e:2x2
jax: 0.10.0
libtpu: 0.0.40
codegen_flags: <defaults>
</compile_context>

<pallas_src>
import jax
import jax.numpy as jnp
from jax.experimental import pallas as pl
from jax.experimental.pallas import tpu as pltpu

N = 2                      # fixed by A0's shape in the module
_LANE = 128                # TPU lane width
_SUBLANE = 8               # f32 sublane count
_DEFAULT_ROW_TILE = 1024   # (4, 1024, 128) f32 block = 2 MiB (safe on v5e/v6e/v7x)


def _cdiv(a: int, b: int) -> int:
    return (a + b - 1) // b


def _round_up(x: int, m: int) -> int:
    return _cdiv(x, m) * m


def mymodel1_kernel(x_ref, o_ref):
    # x_ref / o_ref: (4, rt, 128) float32.  Plane k holds matrix entry k (row-major)
    # for rt*128 batch elements; batch spans sublane x lane -> fully dense vregs.
    x00 = x_ref[0]
    x01 = x_ref[1]
    x10 = x_ref[2]
    x11 = x_ref[3]

    # A0 = [[2, 3], [3, 2]] — compile-time constants.
    # xA = X @ A0
    xa00 = 2.0 * x00 + 3.0 * x01
    xa01 = 3.0 * x00 + 2.0 * x01
    xa10 = 2.0 * x10 + 3.0 * x11
    xa11 = 3.0 * x10 + 2.0 * x11

    # T1 = I - xA
    t100 = 1.0 - xa00
    t101 = -xa01
    t110 = -xa10
    t111 = 1.0 - xa11

    # T2 = I + xA @ xA      (X@A0@X@A0 == (XA)(XA))
    t200 = 1.0 + xa00 * xa00 + xa01 * xa10
    t201 = xa00 * xa01 + xa01 * xa11
    t210 = xa10 * xa00 + xa11 * xa10
    t211 = 1.0 + xa10 * xa01 + xa11 * xa11

    # P = A0 @ T1
    p00 = 2.0 * t100 + 3.0 * t110
    p01 = 2.0 * t101 + 3.0 * t111
    p10 = 3.0 * t100 + 2.0 * t110
    p11 = 3.0 * t101 + 2.0 * t111

    # R = P @ T2 — direct per-plane dense stores (no concatenate / interleave).
    o_ref[0] = p00 * t200 + p01 * t210
    o_ref[1] = p00 * t201 + p01 * t211
    o_ref[2] = p10 * t200 + p11 * t210
    o_ref[3] = p10 * t201 + p11 * t211


def mymodel1_forward_planar(x_planes: jax.Array, *, row_tile: int = _DEFAULT_ROW_TILE) -> jax.Array:
    """Planar entry point: x_planes (4, B) float32 -> (4, B) float32.

    Plane k (k = 0..3, row-major 2x2 index) holds entry k for all B matrices.
    Callers that can keep this layout end-to-end avoid the two HBM transpose passes.
    """
    assert x_planes.shape[0] == N * N, "expected (4, B) planar input"
    B = x_planes.shape[1]
    x_planes = x_planes.astype(jnp.float32)

    rows = _cdiv(max(B, 1), _LANE)                   # rows of 128 batch elements each
    ntiles = max(1, _cdiv(rows, max(row_tile, _SUBLANE)))
    # Ensure >=2 grid steps when there is enough work so the "parallel" axis shards
    # across v7x's two TensorCores (harmless no-op on single-TC v5e/v6e).
    if ntiles == 1 and rows >= 2 * _SUBLANE:
        ntiles = 2
    rt = _round_up(_cdiv(rows, ntiles), _SUBLANE)    # balanced tiles, <1 tile of padding
    rows_p = rt * ntiles
    Bp = rows_p * _LANE
    if Bp != B:
        x_planes = jnp.pad(x_planes, ((0, 0), (0, Bp - B)))

    # Free metadata reshape: each plane is contiguous, so (4, Bp) -> (4, rows_p, 128)
    # just reinterprets the lane axis as (sublane-rows, lanes).
    x3 = x_planes.reshape(N * N, rows_p, _LANE)

    out3 = pl.pallas_call(
        mymodel1_kernel,
        out_shape=jax.ShapeDtypeStruct((N * N, rows_p, _LANE), jnp.float32),
        grid=(ntiles,),
        in_specs=[pl.BlockSpec((N * N, rt, _LANE), lambda i: (0, i, 0))],
        out_specs=pl.BlockSpec((N * N, rt, _LANE), lambda i: (0, i, 0)),
        compiler_params=pltpu.CompilerParams(
            dimension_semantics=("parallel",),       # shards grid steps across v7x's 2 TCs
            vmem_limit_bytes=32 * 1024 * 1024,       # safe on v5e/v6e/v7x
        ),
    )(x3)

    # Trim the zero-padded batch columns (padded columns evaluate to R = A0, finite).
    return out3.reshape(N * N, Bp)[:, :B]


def mymodel1_forward(x: jax.Array, *, row_tile: int = _DEFAULT_ROW_TILE) -> jax.Array:
    """Module-contract entry point: x (B, 2, 2) float32 -> (B, 2, 2) float32."""
    B = x.shape[0]
    x_planes = x.astype(jnp.float32).reshape(B, N * N).T     # (4, B) planar layout
    out_planes = mymodel1_forward_planar(x_planes, row_tile=row_tile)
    return out_planes.T.reshape(B, N, N)


def mymodel1_reference(x: jax.Array) -> jax.Array:
    a0 = jnp.array([[2.0, 3.0], [3.0, 2.0]], dtype=jnp.float32)
    eye = jnp.eye(N, dtype=jnp.float32)
    xA = jnp.einsum("bij,jk->bik", x, a0)
    term1 = eye[None] - xA
    term2 = eye[None] + jnp.einsum("bij,bjk->bik", xA, xA)
    t = jnp.einsum("ij,bjk->bik", a0, term1)
    return jnp.einsum("bij,bjk->bik", t, term2)


if __name__ == "__main__":
    key = jax.random.PRNGKey(0)

    # Small batched input consistent with the forward (x must be (..., 2, 2)).
    B = 2
    x = jax.random.normal(key, (B, N, N), dtype=jnp.float32)
    out = jax.block_until_ready(mymodel1_forward(x))
    ref = mymodel1_reference(x)
    assert out.shape == (B, N, N)
    assert jnp.allclose(out, ref, atol=1e-4, rtol=1e-4), "mismatch vs reference (B=2)"

    # Non-multiple-of-128 batch: exercises the padding/trim path.
    B2 = 300
    x2 = jax.random.normal(jax.random.PRNGKey(1), (B2, N, N), dtype=jnp.float32)
    out2 = jax.block_until_ready(mymodel1_forward(x2))
    ref2 = mymodel1_reference(x2)
    assert out2.shape == (B2, N, N)
    assert jnp.allclose(out2, ref2, atol=1e-4, rtol=1e-4), "mismatch vs reference (B=300)"

    # Larger batch: exercises the multi-tile pipelined grid (and the >=2-step megacore split).
    B3 = 2048
    x3 = jax.random.normal(jax.random.PRNGKey(2), (B3, N, N), dtype=jnp.float32)
    out3 = jax.block_until_ready(mymodel1_forward(x3))
    ref3 = mymodel1_reference(x3)
    assert out3.shape == (B3, N, N)
    assert jnp.allclose(out3, ref3, atol=1e-4, rtol=1e-4), "mismatch vs reference (B=2048)"

    # Planar entry point (layout kept end-to-end, no wrapper transposes).
    xp = x3.reshape(B3, N * N).T
    outp = jax.block_until_ready(mymodel1_forward_planar(xp))
    assert jnp.allclose(outp.T.reshape(B3, N, N), ref3, atol=1e-4, rtol=1e-4), "planar path mismatch"

    print("KERNEL_OK")
</pallas_src>

<mosaic_0001>
module attributes {stable_mosaic.version = 11 : i64} {
  func.func @mymodel1_kernel(%arg0: i32, %arg1: memref<4x8x128xf32, #tpu.memory_space<vmem>>, %arg2: memref<4x8x128xf32, #tpu.memory_space<vmem>>) attributes {dimension_semantics = [#tpu.dimension_semantics<parallel>], iteration_bounds = array<i64: 1>, scalar_prefetch = 0 : i64, scratch_operands = 0 : i64, tpu.core_type = #tpu.core_type<tc>, window_params = [{transform_indices = @transform_0, window_bounds = array<i64: 4, 8, 128>}, {transform_indices = @transform_1, window_bounds = array<i64: 4, 8, 128>}]} {
    %c0 = arith.constant 0 : index
    %c0_0 = arith.constant 0 : index
    %c0_1 = arith.constant 0 : index
    %0 = vector.load %arg1[%c0, %c0_0, %c0_1] : memref<4x8x128xf32, #tpu.memory_space<vmem>>, vector<1x8x128xf32>
    %1 = vector.shape_cast %0 : vector<1x8x128xf32> to vector<8x128xf32>
    %c1 = arith.constant 1 : index
    %c0_2 = arith.constant 0 : index
    %c0_3 = arith.constant 0 : index
    %2 = vector.load %arg1[%c1, %c0_2, %c0_3] : memref<4x8x128xf32, #tpu.memory_space<vmem>>, vector<1x8x128xf32>
    %3 = vector.shape_cast %2 : vector<1x8x128xf32> to vector<8x128xf32>
    %c2 = arith.constant 2 : index
    %c0_4 = arith.constant 0 : index
    %c0_5 = arith.constant 0 : index
    %4 = vector.load %arg1[%c2, %c0_4, %c0_5] : memref<4x8x128xf32, #tpu.memory_space<vmem>>, vector<1x8x128xf32>
    %5 = vector.shape_cast %4 : vector<1x8x128xf32> to vector<8x128xf32>
    %c3 = arith.constant 3 : index
    %c0_6 = arith.constant 0 : index
    %c0_7 = arith.constant 0 : index
    %6 = vector.load %arg1[%c3, %c0_6, %c0_7] : memref<4x8x128xf32, #tpu.memory_space<vmem>>, vector<1x8x128xf32>
    %7 = vector.shape_cast %6 : vector<1x8x128xf32> to vector<8x128xf32>
    %cst = arith.constant 2.000000e+00 : f32
    %8 = vector.broadcast %cst : f32 to vector<8x128xf32>
    %9 = arith.mulf %8, %1 : vector<8x128xf32>
    %cst_8 = arith.constant 3.000000e+00 : f32
    %10 = vector.broadcast %cst_8 : f32 to vector<8x128xf32>
    %11 = arith.mulf %10, %3 : vector<8x128xf32>
    %12 = arith.addf %9, %11 : vector<8x128xf32>
    %cst_9 = arith.constant 3.000000e+00 : f32
    %13 = vector.broadcast %cst_9 : f32 to vector<8x128xf32>
    %14 = arith.mulf %13, %1 : vector<8x128xf32>
    %cst_10 = arith.constant 2.000000e+00 : f32
    %15 = vector.broadcast %cst_10 : f32 to vector<8x128xf32>
    %16 = arith.mulf %15, %3 : vector<8x128xf32>
    %17 = arith.addf %14, %16 : vector<8x128xf32>
    %cst_11 = arith.constant 2.000000e+00 : f32
    %18 = vector.broadcast %cst_11 : f32 to vector<8x128xf32>
    %19 = arith.mulf %18, %5 : vector<8x128xf32>
    %cst_12 = arith.constant 3.000000e+00 : f32
    %20 = vector.broadcast %cst_12 : f32 to vector<8x128xf32>
    %21 = arith.mulf %20, %7 : vector<8x128xf32>
    %22 = arith.addf %19, %21 : vector<8x128xf32>
    %cst_13 = arith.constant 3.000000e+00 : f32
    %23 = vector.broadcast %cst_13 : f32 to vector<8x128xf32>
    %24 = arith.mulf %23, %5 : vector<8x128xf32>
    %cst_14 = arith.constant 2.000000e+00 : f32
    %25 = vector.broadcast %cst_14 : f32 to vector<8x128xf32>
    %26 = arith.mulf %25, %7 : vector<8x128xf32>
    %27 = arith.addf %24, %26 : vector<8x128xf32>
    %cst_15 = arith.constant 1.000000e+00 : f32
    %28 = vector.broadcast %cst_15 : f32 to vector<8x128xf32>
    %29 = arith.subf %28, %12 : vector<8x128xf32>
    %cst_16 = arith.constant 0.000000e+00 : f32
    %30 = vector.broadcast %cst_16 : f32 to vector<8x128xf32>
    %31 = arith.subf %30, %17 : vector<8x128xf32>
    %cst_17 = arith.constant 0.000000e+00 : f32
    %32 = vector.broadcast %cst_17 : f32 to vector<8x128xf32>
    %33 = arith.subf %32, %22 : vector<8x128xf32>
    %cst_18 = arith.constant 1.000000e+00 : f32
    %34 = vector.broadcast %cst_18 : f32 to vector<8x128xf32>
    %35 = arith.subf %34, %27 : vector<8x128xf32>
    %36 = arith.mulf %12, %12 : vector<8x128xf32>
    %cst_19 = arith.constant 1.000000e+00 : f32
    %37 = vector.broadcast %cst_19 : f32 to vector<8x128xf32>
    %38 = arith.addf %37, %36 : vector<8x128xf32>
    %39 = arith.mulf %17, %22 : vector<8x128xf32>
    %40 = arith.addf %38, %39 : vector<8x128xf32>
    %41 = arith.mulf %12, %17 : vector<8x128xf32>
    %42 = arith.mulf %17, %27 : vector<8x128xf32>
    %43 = arith.addf %41, %42 : vector<8x128xf32>
    %44 = arith.mulf %22, %12 : vector<8x128xf32>
    %45 = arith.mulf %27, %22 : vector<8x128xf32>
    %46 = arith.addf %44, %45 : vector<8x128xf32>
    %47 = arith.mulf %22, %17 : vector<8x128xf32>
    %cst_20 = arith.constant 1.000000e+00 : f32
    %48 = vector.broadcast %cst_20 : f32 to vector<8x128xf32>
    %49 = arith.addf %48, %47 : vector<8x128xf32>
    %50 = arith.mulf %27, %27 : vector<8x128xf32>
    %51 = arith.addf %49, %50 : vector<8x128xf32>
    %cst_21 = arith.constant 2.000000e+00 : f32
    %52 = vector.broadcast %cst_21 : f32 to vector<8x128xf32>
    %53 = arith.mulf %52, %29 : vector<8x128xf32>
    %cst_22 = arith.constant 3.000000e+00 : f32
    %54 = vector.broadcast %cst_22 : f32 to vector<8x128xf32>
    %55 = arith.mulf %54, %33 : vector<8x128xf32>
    %56 = arith.addf %53, %55 : vector<8x128xf32>
    %cst_23 = arith.constant 2.000000e+00 : f32
    %57 = vector.broadcast %cst_23 : f32 to vector<8x128xf32>
    %58 = arith.mulf %57, %31 : vector<8x128xf32>
    %cst_24 = arith.constant 3.000000e+00 : f32
    %59 = vector.broadcast %cst_24 : f32 to vector<8x128xf32>
    %60 = arith.mulf %59, %35 : vector<8x128xf32>
    %61 = arith.addf %58, %60 : vector<8x128xf32>
    %cst_25 = arith.constant 3.000000e+00 : f32
    %62 = vector.broadcast %cst_25 : f32 to vector<8x128xf32>
    %63 = arith.mulf %62, %29 : vector<8x128xf32>
    %cst_26 = arith.constant 2.000000e+00 : f32
    %64 = vector.broadcast %cst_26 : f32 to vector<8x128xf32>
    %65 = arith.mulf %64, %33 : vector<8x128xf32>
    %66 = arith.addf %63, %65 : vector<8x128xf32>
    %cst_27 = arith.constant 3.000000e+00 : f32
    %67 = vector.broadcast %cst_27 : f32 to vector<8x128xf32>
    %68 = arith.mulf %67, %31 : vector<8x128xf32>
    %cst_28 = arith.constant 2.000000e+00 : f32
    %69 = vector.broadcast %cst_28 : f32 to vector<8x128xf32>
    %70 = arith.mulf %69, %35 : vector<8x128xf32>
    %71 = arith.addf %68, %70 : vector<8x128xf32>
    %72 = arith.mulf %56, %40 : vector<8x128xf32>
    %73 = arith.mulf %61, %46 : vector<8x128xf32>
    %74 = arith.addf %72, %73 : vector<8x128xf32>
    %c0_29 = arith.constant 0 : index
    %c0_30 = arith.constant 0 : index
    %c0_31 = arith.constant 0 : index
    %75 = vector.load %arg2[%c0_29, %c0_30, %c0_31] : memref<4x8x128xf32, #tpu.memory_space<vmem>>, vector<1x8x128xf32>
    %76 = vector.shape_cast %75 : vector<1x8x128xf32> to vector<8x128xf32>
    %77 = vector.shape_cast %74 : vector<8x128xf32> to vector<1x8x128xf32>
    tpu.vector_store %arg2[%c0_29, %c0_30, %c0_31], %77 {strides = array<i32>} : memref<4x8x128xf32, #tpu.memory_space<vmem>>, vector<1x8x128xf32>,
    %78 = arith.mulf %56, %43 : vector<8x128xf32>
    %79 = arith.mulf %61, %51 : vector<8x128xf32>
    %80 = arith.addf %78, %79 : vector<8x128xf32>
    %c1_32 = arith.constant 1 : index
    %c0_33 = arith.constant 0 : index
    %c0_34 = arith.constant 0 : index
    %81 = vector.load %arg2[%c1_32, %c0_33, %c0_34] : memref<4x8x128xf32, #tpu.memory_space<vmem>>, vector<1x8x128xf32>
    %82 = vector.shape_cast %81 : vector<1x8x128xf32> to vector<8x128xf32>
    %83 = vector.shape_cast %80 : vector<8x128xf32> to vector<1x8x128xf32>
    tpu.vector_store %arg2[%c1_32, %c0_33, %c0_34], %83 {strides = array<i32>} : memref<4x8x128xf32, #tpu.memory_space<vmem>>, vector<1x8x128xf32>,
    %84 = arith.mulf %66, %40 : vector<8x128xf32>
    %85 = arith.mulf %71, %46 : vector<8x128xf32>
    %86 = arith.addf %84, %85 : vector<8x128xf32>
    %c2_35 = arith.constant 2 : index
    %c0_36 = arith.constant 0 : index
    %c0_37 = arith.constant 0 : index
    %87 = vector.load %arg2[%c2_35, %c0_36, %c0_37] : memref<4x8x128xf32, #tpu.memory_space<vmem>>, vector<1x8x128xf32>
    %88 = vector.shape_cast %87 : vector<1x8x128xf32> to vector<8x128xf32>
    %89 = vector.shape_cast %86 : vector<8x128xf32> to vector<1x8x128xf32>
    tpu.vector_store %arg2[%c2_35, %c0_36, %c0_37], %89 {strides = array<i32>} : memref<4x8x128xf32, #tpu.memory_space<vmem>>, vector<1x8x128xf32>,
    %90 = arith.mulf %66, %43 : vector<8x128xf32>
    %91 = arith.mulf %71, %51 : vector<8x128xf32>
    %92 = arith.addf %90, %91 : vector<8x128xf32>
    %c3_38 = arith.constant 3 : index
    %c0_39 = arith.constant 0 : index
    %c0_40 = arith.constant 0 : index
    %93 = vector.load %arg2[%c3_38, %c0_39, %c0_40] : memref<4x8x128xf32, #tpu.memory_space<vmem>>, vector<1x8x128xf32>
    %94 = vector.shape_cast %93 : vector<1x8x128xf32> to vector<8x128xf32>
    %95 = vector.shape_cast %92 : vector<8x128xf32> to vector<1x8x128xf32>
    tpu.vector_store %arg2[%c3_38, %c0_39, %c0_40], %95 {strides = array<i32>} : memref<4x8x128xf32, #tpu.memory_space<vmem>>, vector<1x8x128xf32>,
    return
  }
  func.func @transform_0(%arg0: i32) -> (i32, i32, i32) {
    %c0_i32 = arith.constant 0 : i32
    %c0_i32_0 = arith.constant 0 : i32
    %c0_i32_1 = arith.constant 0 : i32
    return %c0_i32, %arg0, %c0_i32_0 : i32, i32, i32
  }
  func.func @transform_1(%arg0: i32) -> (i32, i32, i32) {
    %c0_i32 = arith.constant 0 : i32
    %c0_i32_0 = arith.constant 0 : i32
    %c0_i32_1 = arith.constant 0 : i32
    return %c0_i32, %arg0, %c0_i32_0 : i32, i32, i32
  }
}

</mosaic_0001>

<bundles_post_ra>
// kernel: tpu_custom_call.1
= control target key start
LH: loop header
LB: loop body
LE: loop exit
PB: predicated region body
PF: predicated region fallthrough
CT: control target
= control target key end

     0   :  { %6 = vsyncpa [#allocation3], 0  ;;  %s193_s0 = inlined_call_operand.hbm [shape: f32[4,8,128], index: 0, kind: input, shape index: {}]   ;;  %s194_s1 = inlined_call_operand.hbm [shape: f32[4,8,128], index: 1, kind: output, shape index: {}]  }
   0x1   :  { %7 = vsyncpa [#allocation4], 0  ;;  %s12_s8 = sshll.u32 %s193_s0, 4  ;;  %s167_s9 = smov [#allocation2]   ;;  %s13_s8 = int_to_ptr.hbm [resolvable:$true] %s12_s8 }
   0x2   :  { %s14_s10 = sshll.u32 %s167_s9, 4  ;;  %s168_s11 = smov 128   ;;  %s15_s10 = int_to_ptr.vmem [resolvable:$true] %s14_s10 }
   0x3   :  { %s169_s12 = smov 8  }
   0x4   :  { %20 = dma.hbm_to_vmem [thread:$0]  %s13_s8, 512, %s15_s10, [#allocation3], %s168_s11, %s168_s11, %s169_s12  }
   0x5   :  { %163 = dma.done.wait [#allocation3], 512  }
   0x6   :  { %164 = vsyncadd [#allocation3], 4294966784  ;;  %v25_v0 = vld [vmem:[#allocation2] sm:$0xff]  ;;  %v27_v1 = vld [vmem:[#allocation2 + $0x8] sm:$0xff]  ;;  %s170_s0 = smov [#allocation5]   ;;  %s98_s16 = sshll.u32 %s194_s1, 4  ;;  %s99_s16 = int_to_ptr.hbm [resolvable:$true] %s98_s16 }
   0x7   :  { %v29_v2 = vld [vmem:[#allocation2 + $0x10] sm:$0xff]  ;;  %v31_v3 = vld [vmem:[#allocation2 + $0x18] sm:$0xff]  ;;  %v32_v4 = vmul.f32 2.0, %v25_v0  ;;  %v33_v5 = vmul.f32 3.0, %v27_v1  ;;  %v35_v6 = vmul.f32 3.0, %v25_v0  ;;  %v36_v7 = vmul.f32 2.0, %v27_v1 }
   0x8   :  { %v38_v8 = vmul.f32 2.0, %v29_v2  ;;  %v39_v9 = vmul.f32 3.0, %v31_v3  ;;  %v41_v10 = vmul.f32 3.0, %v29_v2  ;;  %v42_v11 = vmul.f32 2.0, %v31_v3  ;;  %s96_s13 = sshll.u32 %s170_s0, 4  ;;  %s97_s13 = int_to_ptr.vmem [resolvable:$true] %s96_s13 }
   0x9   :  { %v34_v12 = vadd.f32 %v33_v5, %v32_v4  ;;  %v37_v13 = vadd.f32 %v36_v7, %v35_v6 }
   0xa   :  { %v40_v14 = vadd.f32 %v39_v9, %v38_v8  ;;  %v43_v15 = vadd.f32 %v42_v11, %v41_v10 }
   0xb   :  { %v44_v16 = vsub.f32 1.0, %v34_v12  ;;  %v45_v17 = vsub.f32 0.0, %v37_v13  ;;  %v48_v18 = vmul.f32 %v34_v12, %v34_v12  ;;  %v52_v19 = vmul.f32 %v37_v13, %v34_v12 }
   0xc   :  { %v46_v20 = vsub.f32 0.0, %v40_v14  ;;  %v47_v21 = vsub.f32 1.0, %v43_v15  ;;  %v50_v22 = vmul.f32 %v40_v14, %v37_v13  ;;  %v55_v23 = vmul.f32 %v40_v14, %v34_v12 }
   0xd   :  { %v49_v24 = vadd.f32 1.0, %v48_v18  ;;  %v56_v25 = vmul.f32 %v43_v15, %v40_v14  ;;  %v61_v26 = vmul.f32 2.0, %v44_v16  ;;  %v64_v27 = vmul.f32 2.0, %v45_v17 }
   0xe   :  { %v62_v28 = vmul.f32 3.0, %v46_v20  ;;  %v65_v29 = vmul.f32 3.0, %v47_v21  ;;  %v53_v30 = vmul.f32 %v43_v15, %v37_v13  ;;  %v58_v31 = vadd.f32 1.0, %v50_v22 }
   0xf   :  { %v51_v32 = vadd.f32 %v50_v22, %v49_v24  ;;  %v57_v33 = vadd.f32 %v56_v25, %v55_v23  ;;  %v59_v34 = vmul.f32 %v43_v15, %v43_v15  ;;  %v67_v35 = vmul.f32 3.0, %v44_v16 }
  0x10   :  { %v63_v36 = vadd.f32 %v62_v28, %v61_v26  ;;  %v66_v37 = vadd.f32 %v65_v29, %v64_v27  ;;  %v54_v38 = vadd.f32 %v53_v30, %v52_v19  ;;  %v68_v39 = vmul.f32 2.0, %v46_v20 }
  0x11   :  { %v60_v40 = vadd.f32 %v59_v34, %v58_v31  ;;  %v70_v41 = vmul.f32 3.0, %v45_v17  ;;  %v71_v42 = vmul.f32 2.0, %v47_v21 }
  0x12   :  { %v73_v43 = vmul.f32 %v63_v36, %v51_v32  ;;  %v74_v44 = vmul.f32 %v66_v37, %v57_v33  ;;  %v77_v45 = vmul.f32 %v63_v36, %v54_v38  ;;  %v69_v46 = vadd.f32 %v68_v39, %v67_v35 }
  0x13   :  { %v78_v47 = vmul.f32 %v66_v37, %v60_v40  ;;  %v72_v48 = vadd.f32 %v71_v42, %v70_v41 }
  0x14   :  { %v75_v49 = vadd.f32 %v74_v44, %v73_v43  ;;  %v82_v50 = vmul.f32 %v69_v46, %v51_v32  ;;  %v87_v51 = vmul.f32 %v69_v46, %v54_v38 }
  0x15   :  { %v79_v52 = vadd.f32 %v78_v47, %v77_v45  ;;  %v83_v53 = vmul.f32 %v72_v48, %v57_v33  ;;  %v88_v54 = vmul.f32 %v72_v48, %v60_v40 }
  0x16   :  { %76 = vst [vmem:[#allocation5] sm:$0xff] %v75_v49 }
  0x17   :  { %81 = vst [vmem:[#allocation5 + $0x8] sm:$0xff] %v79_v52  ;;  %v84_v55 = vadd.f32 %v83_v53, %v82_v50  ;;  %v89_v56 = vadd.f32 %v88_v54, %v87_v51 }
  0x19   :  { %86 = vst [vmem:[#allocation5 + $0x10] sm:$0xff] %v84_v55 }
  0x1a   :  { %91 = vst [vmem:[#allocation5 + $0x18] sm:$0xff] %v89_v56 }
  0x1b   :  { %104 = dma.vmem_to_hbm [thread:$0]  %s97_s13, 512, %s99_s16, [#allocation4], %s168_s11, %s168_s11, %s169_s12  }
  0x1c   :  { %165 = dma.done.wait [#allocation4], 512  }
  0x1d   :  { %166 = vsyncadd [#allocation4], 4294966784 }
  0x1e   :  { %109 = vsyncpa [#allocation3], 1 }
  0x1f   :  { %110 = vsyncpa [#allocation4], 1 }

</bundles_post_ra>
